<compile_context>
chip_gen: v6e
topology: v6e:2x2x1
jax: 0.10.0
libtpu: 0.0.40
codegen_flags: <defaults>
</compile_context>

<pallas_src>
import functools

import jax
import jax.numpy as jnp
from jax.experimental import pallas as pl
from jax.experimental.pallas import tpu as pltpu


def _cdiv(a, b):
    return -(-a // b)


def _round_up(x, m):
    return _cdiv(x, m) * m


def _pad_lanes(d):
    # 128-lane minimum; above 128 use 256 granularity so the output/N dim fills
    # the 256x256 MXU on v6e/v7x (modest over-pad on v5e's 128x128 MXU).
    return 128 if d <= 128 else _round_up(d, 256)


# ----------------------------- fused Pallas kernel --------------------------

def _domain_agg_kernel(qa_ref, qb_ref, wk_ref, bn_b_ref, fc_w_ref, fc_b_ref,
                       logit_ref, prob_ref, win_ref, feat_acc,
                       *, tm, w_img, hb, hw, inv_hw, need_mask):
    t = pl.program_id(1)

    @pl.when(t == 0)
    def _init():
        feat_acc[...] = jnp.zeros_like(feat_acc)

    # Assemble the contiguous window Q[t*tm : t*tm + tm + hb) in VMEM scratch
    # (current row tile + halo block fetched by the second BlockSpec).
    win_ref[pl.ds(0, tm), :] = qa_ref[...]
    win_ref[pl.ds(tm, hb), :] = qb_ref[...]

    # 3x3 conv = three row-shifted (tm, 3*Cin) @ (3*Cin, CHP) MXU matmuls.
    # (Width taps were folded into Q's last dim by the wrapper; row tap kh is a
    # pure row shift of kh*W in the flattened window -> no in-kernel reshapes.)
    y = jnp.dot(win_ref[pl.ds(0, tm), :], wk_ref[0],
                preferred_element_type=jnp.float32)
    for kh in (1, 2):
        y = y + jnp.dot(win_ref[pl.ds(kh * w_img, tm), :], wk_ref[kh],
                        preferred_element_type=jnp.float32)
    y = jnp.maximum(y + bn_b_ref[...], 0.0)

    if need_mask:
        # Rows beyond H*W are tile padding: mask them out of the pooled sum
        # (zero-padded patches still give relu(bn_bias) != 0 otherwise).
        rows = jax.lax.broadcasted_iota(jnp.int32, (tm, 1), 0) + t * tm
        y = jnp.where(rows < hw, y, 0.0)

    # Global average pool: accumulate the row-sum; scale by 1/(H*W) at finalize.
    feat_acc[...] += jnp.sum(y, axis=0, keepdims=True)

    @pl.when(t == pl.num_programs(1) - 1)
    def _finalize():
        feat = feat_acc[...] * inv_hw                               # (1, CHP) f32
        logits = jnp.dot(feat, fc_w_ref[...].astype(jnp.float32),
                         preferred_element_type=jnp.float32) + fc_b_ref[...]
        # fc_b_ref holds -1e30 in padded class columns -> softmax over real
        # classes only (padded columns underflow to exactly 0).
        m = jnp.max(logits, axis=-1, keepdims=True)
        e = jnp.exp(logits - m)
        inv_den = pl.reciprocal(jnp.sum(e, axis=-1, keepdims=True), approx=False)
        logit_ref[...] = logits
        prob_ref[...] = e * inv_den


def _fused_forward_pallas(q, wk, bn_b, fc_w, fc_b, *, hw, w_img, tm, hb,
                          n_tiles, need_mask, compute_dtype):
    n, rp, k3 = q.shape
    chp = wk.shape[-1]
    ncp = fc_w.shape[-1]
    stride_b = tm // hb          # halo block index stride (tm is a multiple of hb)

    kernel = functools.partial(
        _domain_agg_kernel, tm=tm, w_img=w_img, hb=hb, hw=hw,
        inv_hw=1.0 / hw, need_mask=need_mask)

    flops = 2 * n * hw * (3 * k3) * chp + 2 * n * chp * ncp
    bytes_accessed = (q.size * q.dtype.itemsize
                      + wk.size * wk.dtype.itemsize
                      + fc_w.size * fc_w.dtype.itemsize
                      + 4 * (bn_b.size + fc_b.size + 2 * n * ncp))
    cost = pl.CostEstimate(flops=flops, transcendentals=n * ncp,
                           bytes_accessed=bytes_accessed)

    grid_spec = pltpu.PrefetchScalarGridSpec(
        num_scalar_prefetch=0,
        grid=(n, n_tiles),
        in_specs=[
            # current row tile of Q
            pl.BlockSpec((None, tm, k3), lambda b, t: (b, t, 0)),
            # halo block: rows [(t+1)*tm, (t+1)*tm + hb) of the same Q array
            pl.BlockSpec((None, hb, k3),
                         lambda b, t: (b, (t + 1) * stride_b, 0)),
            # grid-invariant operands (constant block index -> fetched once)
            pl.BlockSpec((3, k3, chp), lambda b, t: (0, 0, 0)),   # conv w * BN scale
            pl.BlockSpec((1, chp), lambda b, t: (0, 0)),          # folded BN bias
            pl.BlockSpec((chp, ncp), lambda b, t: (0, 0)),        # fc weight
            pl.BlockSpec((1, ncp), lambda b, t: (0, 0)),          # fc bias + pad mask
        ],
        out_specs=(
            pl.BlockSpec((None, 1, ncp), lambda b, t: (b, 0, 0)),  # logits
            pl.BlockSpec((None, 1, ncp), lambda b, t: (b, 0, 0)),  # probs
        ),
        scratch_shapes=[
            pltpu.VMEM((tm + hb, k3), compute_dtype),   # halo window
            pltpu.VMEM((1, chp), jnp.float32),          # pooled feature accumulator
        ],
    )

    logits_p, probs_p = pl.pallas_call(
        kernel,
        out_shape=(jax.ShapeDtypeStruct((n, 1, ncp), jnp.float32),
                   jax.ShapeDtypeStruct((n, 1, ncp), jnp.float32)),
        grid_spec=grid_spec,
        compiler_params=pltpu.CompilerParams(
            dimension_semantics=("parallel", "arbitrary"),
            vmem_limit_bytes=32 * 1024 * 1024),
        cost_estimate=cost,
    )(q, q, wk, bn_b, fc_w, fc_b)
    return logits_p.reshape(n, ncp), probs_p.reshape(n, ncp)


# ------------------------------ JAX glue ------------------------------------

def domain_agg_forward(x_nchw, params, agg_only=True,
                       compute_dtype=jnp.bfloat16, max_rows_per_tile=2048):
    """Pallas implementation of DomainAGG.forward (BN in eval mode)."""
    x = jnp.transpose(x_nchw, (0, 2, 3, 1)).astype(jnp.float32)    # NHWC
    n, h, w, cin = x.shape
    hw = h * w
    ch = params['conv_w'].shape[0]
    num_classes = params['fc_w'].shape[0]
    k3 = 3 * cin
    chp = _pad_lanes(ch)
    ncp = _pad_lanes(num_classes)

    # Width-only im2col: Q[n, hp*W + w, kw*Cin + c] = x_pad[n, hp, w+kw, c]
    # (~3x the raw input instead of the 9x full im2col; row taps are in-kernel).
    xp = jnp.pad(x, ((0, 0), (1, 1), (1, 1), (0, 0)))
    q = jnp.stack([xp[:, :, kw:kw + w, :] for kw in range(3)], axis=3)
    q = q.reshape(n, (h + 2) * w, k3)

    # -- backbone operands (BN folded) --
    eps = 1e-5
    inv_std = 1.0 / jnp.sqrt(params['bn_var'] + eps)
    scale = params['bn_gamma'] * inv_std                           # (CH,)
    bn_bias = params['bn_beta'] - params['bn_mean'] * scale        # (CH,)
    # conv weight (O, Cin, KH, KW) -> (KH, KW, Cin, O) -> (3, 3*Cin, O); fold BN scale.
    wk = jnp.transpose(params['conv_w'], (2, 3, 1, 0)).reshape(3, k3, ch)
    wk = wk * scale[None, None, :]
    wk = jnp.pad(wk, ((0, 0), (0, 0), (0, chp - ch)))
    bn_bias_row = jnp.pad(bn_bias[None, :], ((0, 0), (0, chp - ch)))

    # -- classifier operands -- (PyTorch Linear weight is (classes, hidden))
    fc_w = jnp.pad(jnp.transpose(params['fc_w']),
                   ((0, chp - ch), (0, ncp - num_classes)))
    fc_b = jnp.pad(params['fc_b'][None, :], ((0, 0), (0, ncp - num_classes)))
    pad_mask = (jnp.arange(ncp) >= num_classes).astype(jnp.float32) * (-1e30)
    fc_b_masked = fc_b + pad_mask[None, :]

    # -- tiling: halo granularity hb, budget-capped row tile tm --
    hb = _round_up(2 * w, 16)                    # halo rows, sublane-aligned
    dt_bytes = jnp.dtype(compute_dtype).itemsize
    vmem_budget = 20 * 1024 * 1024               # works under every gen's scoped limit
    cap = min(max_rows_per_tile, vmem_budget // max(1, 3 * k3 * dt_bytes))
    cap = max(hb, (cap // hb) * hb)
    n_tiles0 = _cdiv(hw, cap)
    tm = _round_up(_cdiv(hw, n_tiles0), hb)      # balanced tiles, multiple of hb
    n_tiles = _cdiv(hw, tm)
    need_mask = (n_tiles * tm != hw)

    rp = n_tiles * tm + hb                        # padded Q rows (tiles + halo)
    q = jnp.pad(q, ((0, 0), (0, rp - q.shape[1]), (0, 0)))

    # bf16 matmul operands (f32 accumulate stays in-kernel); bias rows stay f32.
    q = q.astype(compute_dtype)
    wk = wk.astype(compute_dtype)
    fc_w = fc_w.astype(compute_dtype)

    logits_p, probs_p = _fused_forward_pallas(
        q, wk, bn_bias_row, fc_w, fc_b_masked,
        hw=hw, w_img=w, tm=tm, hb=hb, n_tiles=n_tiles,
        need_mask=need_mask, compute_dtype=compute_dtype)

    net_agg = logits_p[:, :num_classes]
    probs = probs_p[:, :num_classes]
    end_points = {'Predictions': probs}

    # classifierrand shares weights with classifier -> identical result: alias.
    net_rand = None if agg_only else net_agg
    return net_agg, net_rand, end_points


# --------------------------- pure-JAX reference ------------------------------

def reference_forward(x_nchw, params):
    y = jax.lax.conv_general_dilated(
        x_nchw.astype(jnp.float32), params['conv_w'], (1, 1), ((1, 1), (1, 1)),
        dimension_numbers=('NCHW', 'OIHW', 'NCHW'))
    eps = 1e-5
    inv_std = 1.0 / jnp.sqrt(params['bn_var'] + eps)
    scale = (params['bn_gamma'] * inv_std).reshape(1, -1, 1, 1)
    bias = (params['bn_beta'] - params['bn_mean'] * params['bn_gamma'] * inv_std
            ).reshape(1, -1, 1, 1)
    y = jnp.maximum(y * scale + bias, 0.0)
    feat = jnp.mean(y, axis=(2, 3))
    logits = feat @ params['fc_w'].T + params['fc_b']
    probs = jax.nn.softmax(logits, axis=-1)
    return logits, probs


# --------------------------------- main ---------------------------------------

def _make_params(key, cin, ch, nc):
    ks = jax.random.split(key, 7)
    return {
        'conv_w': jax.random.normal(ks[0], (ch, cin, 3, 3), jnp.float32) * 0.1,
        'bn_gamma': 1.0 + 0.1 * jax.random.normal(ks[1], (ch,), jnp.float32),
        'bn_beta': 0.1 * jax.random.normal(ks[2], (ch,), jnp.float32),
        'bn_mean': 0.05 * jax.random.normal(ks[3], (ch,), jnp.float32),
        'bn_var': 1.0 + 0.1 * jnp.abs(jax.random.normal(ks[4], (ch,), jnp.float32)),
        'fc_w': jax.random.normal(ks[5], (nc, ch), jnp.float32) * 0.1,
        'fc_b': 0.01 * jax.random.normal(ks[6], (nc,), jnp.float32),
    }


if __name__ == "__main__":
    root = jax.random.PRNGKey(0)
    kp1, kp2, kp3, kx1, kx2, kx3 = jax.random.split(root, 6)

    # --- case 1: primary small shapes; f32 (tight check) + bf16 (MXU fast path)
    x1 = jax.random.normal(kx1, (2, 4, 16, 16), dtype=jnp.float32)
    p1 = _make_params(kp1, 4, 32, 10)
    ref_logits, ref_probs = reference_forward(x1, p1)

    logits_f32, nr, ep = domain_agg_forward(x1, p1, agg_only=True,
                                            compute_dtype=jnp.float32)
    logits_f32 = jax.block_until_ready(logits_f32)
    probs_f32 = jax.block_until_ready(ep['Predictions'])
    assert nr is None
    assert logits_f32.shape == (2, 10) and probs_f32.shape == (2, 10)
    assert jnp.allclose(logits_f32, ref_logits, rtol=1e-4, atol=1e-4)
    assert jnp.allclose(probs_f32, ref_probs, rtol=1e-4, atol=1e-4)

    logits_bf16, nr2, ep2 = domain_agg_forward(x1, p1, agg_only=False,
                                               compute_dtype=jnp.bfloat16)
    logits_bf16 = jax.block_until_ready(logits_bf16)
    probs_bf16 = jax.block_until_ready(ep2['Predictions'])
    assert jnp.allclose(logits_bf16, ref_logits, rtol=2e-2, atol=2e-2)
    assert jnp.allclose(probs_bf16, ref_probs, rtol=2e-2, atol=2e-2)
    assert nr2 is not None and jnp.allclose(nr2, logits_bf16)   # aliased rand head

    # --- case 2: odd spatial size -> padded rows + in-kernel pool mask
    x2 = jax.random.normal(kx2, (1, 3, 10, 10), dtype=jnp.float32)
    p2 = _make_params(kp2, 3, 24, 7)
    r2_logits, r2_probs = reference_forward(x2, p2)
    l2, _, e2 = domain_agg_forward(x2, p2, compute_dtype=jnp.float32)
    l2 = jax.block_until_ready(l2)
    pr2 = jax.block_until_ready(e2['Predictions'])
    assert jnp.allclose(l2, r2_logits, rtol=1e-4, atol=1e-4)
    assert jnp.allclose(pr2, r2_probs, rtol=1e-4, atol=1e-4)

    # --- case 3: multi-tile row accumulation (small tile cap forces 3 row tiles)
    x3 = jax.random.normal(kx3, (2, 3, 18, 16), dtype=jnp.float32)
    p3 = _make_params(kp3, 3, 16, 5)
    r3_logits, r3_probs = reference_forward(x3, p3)
    l3, _, e3 = domain_agg_forward(x3, p3, compute_dtype=jnp.float32,
                                   max_rows_per_tile=128)
    l3 = jax.block_until_ready(l3)
    pr3 = jax.block_until_ready(e3['Predictions'])
    assert jnp.allclose(l3, r3_logits, rtol=1e-4, atol=1e-4)
    assert jnp.allclose(pr3, r3_probs, rtol=1e-4, atol=1e-4)

    print("KERNEL_OK")
</pallas_src>

<mosaic_0001>
module attributes {stable_mosaic.version = 11 : i64} {
  func.func @_domain_agg_kernel(%arg0: i32, %arg1: i32, %arg2: memref<1x256x12xf32, #tpu.memory_space<vmem>>, %arg3: memref<1x32x12xf32, #tpu.memory_space<vmem>>, %arg4: memref<3x12x128xf32, #tpu.memory_space<vmem>>, %arg5: memref<1x128xf32, #tpu.memory_space<vmem>>, %arg6: memref<128x128xf32, #tpu.memory_space<vmem>>, %arg7: memref<1x128xf32, #tpu.memory_space<vmem>>, %arg8: memref<1x1x128xf32, #tpu.memory_space<vmem>>, %arg9: memref<1x1x128xf32, #tpu.memory_space<vmem>>, %arg10: memref<288x12xf32, #tpu.memory_space<vmem>>, %arg11: memref<1x128xf32, #tpu.memory_space<vmem>>) attributes {dimension_semantics = [#tpu.dimension_semantics<parallel>, #tpu.dimension_semantics<arbitrary>], iteration_bounds = array<i64: 2, 1>, scalar_prefetch = 0 : i64, scratch_operands = 2 : i64, tpu.core_type = #tpu.core_type<tc>, window_params = [{transform_indices = @transform_0, window_bounds = array<i64: 1, 256, 12>}, {transform_indices = @transform_1, window_bounds = array<i64: 1, 32, 12>}, {pipeline_mode = #tpu.pipeline_mode<synchronous>, transform_indices = @transform_2, window_bounds = array<i64: 3, 12, 128>}, {pipeline_mode = #tpu.pipeline_mode<synchronous>, transform_indices = @transform_3, window_bounds = array<i64: 1, 128>}, {pipeline_mode = #tpu.pipeline_mode<synchronous>, transform_indices = @transform_4, window_bounds = array<i64: 128, 128>}, {pipeline_mode = #tpu.pipeline_mode<synchronous>, transform_indices = @transform_5, window_bounds = array<i64: 1, 128>}, {transform_indices = @transform_6, window_bounds = array<i64: 1, 1, 128>}, {transform_indices = @transform_7, window_bounds = array<i64: 1, 1, 128>}]} {
    %c0_i32 = arith.constant 0 : i32
    %0 = arith.cmpi eq, %arg1, %c0_i32 : i32
    %1 = arith.extui %0 : i1 to i32
    %c0_i32_0 = arith.constant 0 : i32
    %2 = arith.cmpi ne, %1, %c0_i32_0 : i32
    scf.if %2 {
      %cst_32 = arith.constant 0.000000e+00 : f32
      %36 = vector.broadcast %cst_32 : f32 to vector<1x128xf32>
      %c0_33 = arith.constant 0 : index
      %c0_34 = arith.constant 0 : index
      %37 = vector.load %arg11[%c0_33, %c0_34] : memref<1x128xf32, #tpu.memory_space<vmem>>, vector<1x128xf32>
      tpu.vector_store %arg11[%c0_33, %c0_34], %36 {strides = array<i32>} : memref<1x128xf32, #tpu.memory_space<vmem>>, vector<1x128xf32>,
    } else {
    }
    %c0 = arith.constant 0 : index
    %c0_1 = arith.constant 0 : index
    %c0_2 = arith.constant 0 : index
    %3 = vector.load %arg2[%c0, %c0_1, %c0_2] : memref<1x256x12xf32, #tpu.memory_space<vmem>>, vector<1x256x12xf32>
    %4 = vector.shape_cast %3 : vector<1x256x12xf32> to vector<256x12xf32>
    %c0_3 = arith.constant 0 : index
    %c0_4 = arith.constant 0 : index
    %5 = vector.load %arg10[%c0_3, %c0_4] : memref<288x12xf32, #tpu.memory_space<vmem>>, vector<256x12xf32>
    tpu.vector_store %arg10[%c0_3, %c0_4], %4 {strides = array<i32>} : memref<288x12xf32, #tpu.memory_space<vmem>>, vector<256x12xf32>,
    %c0_5 = arith.constant 0 : index
    %c0_6 = arith.constant 0 : index
    %c0_7 = arith.constant 0 : index
    %6 = vector.load %arg3[%c0_5, %c0_6, %c0_7] : memref<1x32x12xf32, #tpu.memory_space<vmem>>, vector<1x32x12xf32>
    %7 = vector.shape_cast %6 : vector<1x32x12xf32> to vector<32x12xf32>
    %c256 = arith.constant 256 : index
    %c0_8 = arith.constant 0 : index
    %8 = vector.load %arg10[%c256, %c0_8] : memref<288x12xf32, #tpu.memory_space<vmem>>, vector<32x12xf32>
    tpu.vector_store %arg10[%c256, %c0_8], %7 {strides = array<i32>} : memref<288x12xf32, #tpu.memory_space<vmem>>, vector<32x12xf32>,
    %c0_9 = arith.constant 0 : index
    %c0_10 = arith.constant 0 : index
    %9 = vector.load %arg10[%c0_9, %c0_10] : memref<288x12xf32, #tpu.memory_space<vmem>>, vector<256x12xf32>
    %c0_11 = arith.constant 0 : index
    %c0_12 = arith.constant 0 : index
    %c0_13 = arith.constant 0 : index
    %10 = vector.load %arg4[%c0_11, %c0_12, %c0_13] : memref<3x12x128xf32, #tpu.memory_space<vmem>>, vector<1x12x128xf32>
    %11 = vector.shape_cast %10 : vector<1x12x128xf32> to vector<12x128xf32>
    %cst = arith.constant dense<0.000000e+00> : vector<256x128xf32>
    %12 = tpu.matmul %9, %11, %cst {dimension_numbers = #tpu.dot_dimension_numbers<[1], [0], [0], [1], [0, 0, 1, 1], [], []>} : vector<256x12xf32>, vector<12x128xf32>, vector<256x128xf32> -> vector<256x128xf32>
    %c16 = arith.constant 16 : index
    %c0_14 = arith.constant 0 : index
    %13 = vector.load %arg10[%c16, %c0_14] : memref<288x12xf32, #tpu.memory_space<vmem>>, vector<256x12xf32>
    %c1 = arith.constant 1 : index
    %c0_15 = arith.constant 0 : index
    %c0_16 = arith.constant 0 : index
    %14 = vector.load %arg4[%c1, %c0_15, %c0_16] : memref<3x12x128xf32, #tpu.memory_space<vmem>>, vector<1x12x128xf32>
    %15 = vector.shape_cast %14 : vector<1x12x128xf32> to vector<12x128xf32>
    %cst_17 = arith.constant dense<0.000000e+00> : vector<256x128xf32>
    %16 = tpu.matmul %13, %15, %cst_17 {dimension_numbers = #tpu.dot_dimension_numbers<[1], [0], [0], [1], [0, 0, 1, 1], [], []>} : vector<256x12xf32>, vector<12x128xf32>, vector<256x128xf32> -> vector<256x128xf32>
    %17 = arith.addf %12, %16 : vector<256x128xf32>
    %c32 = arith.constant 32 : index
    %c0_18 = arith.constant 0 : index
    %18 = vector.load %arg10[%c32, %c0_18] : memref<288x12xf32, #tpu.memory_space<vmem>>, vector<256x12xf32>
    %c2 = arith.constant 2 : index
    %c0_19 = arith.constant 0 : index
    %c0_20 = arith.constant 0 : index
    %19 = vector.load %arg4[%c2, %c0_19, %c0_20] : memref<3x12x128xf32, #tpu.memory_space<vmem>>, vector<1x12x128xf32>
    %20 = vector.shape_cast %19 : vector<1x12x128xf32> to vector<12x128xf32>
    %cst_21 = arith.constant dense<0.000000e+00> : vector<256x128xf32>
    %21 = tpu.matmul %18, %20, %cst_21 {dimension_numbers = #tpu.dot_dimension_numbers<[1], [0], [0], [1], [0, 0, 1, 1], [], []>} : vector<256x12xf32>, vector<12x128xf32>, vector<256x128xf32> -> vector<256x128xf32>
    %22 = arith.addf %17, %21 : vector<256x128xf32>
    %c0_22 = arith.constant 0 : index
    %c0_23 = arith.constant 0 : index
    %23 = vector.load %arg5[%c0_22, %c0_23] : memref<1x128xf32, #tpu.memory_space<vmem>>, vector<1x128xf32>
    %24 = vector.broadcast %23 : vector<1x128xf32> to vector<256x128xf32>
    %25 = arith.addf %22, %24 : vector<256x128xf32>
    %cst_24 = arith.constant 0.000000e+00 : f32
    %26 = vector.broadcast %cst_24 : f32 to vector<256x128xf32>
    %27 = arith.maximumf %25, %26 : vector<256x128xf32>
    %c0_25 = arith.constant 0 : index
    %c0_26 = arith.constant 0 : index
    %28 = vector.load %arg11[%c0_25, %c0_26] : memref<1x128xf32, #tpu.memory_space<vmem>>, vector<1x128xf32>
    %cst_27 = arith.constant dense<0.000000e+00> : vector<128xf32>
    %29 = vector.multi_reduction <add>, %27, %cst_27 [0] : vector<256x128xf32> to vector<128xf32>
    %30 = vector.shape_cast %29 : vector<128xf32> to vector<1x128xf32>
    %31 = arith.addf %28, %30 : vector<1x128xf32>
    %c0_28 = arith.constant 0 : index
    %c0_29 = arith.constant 0 : index
    %32 = vector.load %arg11[%c0_28, %c0_29] : memref<1x128xf32, #tpu.memory_space<vmem>>, vector<1x128xf32>
    tpu.vector_store %arg11[%c0_28, %c0_29], %31 {strides = array<i32>} : memref<1x128xf32, #tpu.memory_space<vmem>>, vector<1x128xf32>,
    %c0_i32_30 = arith.constant 0 : i32
    %33 = arith.cmpi eq, %arg1, %c0_i32_30 : i32
    %34 = arith.extui %33 : i1 to i32
    %c0_i32_31 = arith.constant 0 : i32
    %35 = arith.cmpi ne, %34, %c0_i32_31 : i32
    scf.if %35 {
      %c0_32 = arith.constant 0 : index
      %c0_33 = arith.constant 0 : index
      %36 = vector.load %arg11[%c0_32, %c0_33] : memref<1x128xf32, #tpu.memory_space<vmem>>, vector<1x128xf32>
      %cst_34 = arith.constant 3.906250e-03 : f32
      %37 = vector.broadcast %cst_34 : f32 to vector<1x128xf32>
      %38 = arith.mulf %36, %37 : vector<1x128xf32>
      %c0_35 = arith.constant 0 : index
      %c0_36 = arith.constant 0 : index
      %39 = vector.load %arg6[%c0_35, %c0_36] : memref<128x128xf32, #tpu.memory_space<vmem>>, vector<128x128xf32>
      %cst_37 = arith.constant dense<0.000000e+00> : vector<1x128xf32>
      %40 = tpu.matmul %38, %39, %cst_37 {dimension_numbers = #tpu.dot_dimension_numbers<[1], [0], [0], [1], [0, 0, 1, 1], [], []>} : vector<1x128xf32>, vector<128x128xf32>, vector<1x128xf32> -> vector<1x128xf32>
      %c0_38 = arith.constant 0 : index
      %c0_39 = arith.constant 0 : index
      %41 = vector.load %arg7[%c0_38, %c0_39] : memref<1x128xf32, #tpu.memory_space<vmem>>, vector<1x128xf32>
      %42 = arith.addf %40, %41 : vector<1x128xf32>
      %cst_40 = arith.constant dense<0xFF800000> : vector<1xf32>
      %43 = vector.multi_reduction <maximumf>, %42, %cst_40 [1] : vector<1x128xf32> to vector<1xf32>
      %44 = vector.shape_cast %43 : vector<1xf32> to vector<1x1xf32>
      %45 = vector.broadcast %44 : vector<1x1xf32> to vector<1x128xf32>
      %46 = arith.subf %42, %45 : vector<1x128xf32>
      %47 = math.exp %46 : vector<1x128xf32>
      %cst_41 = arith.constant dense<0.000000e+00> : vector<1xf32>
      %48 = vector.multi_reduction <add>, %47, %cst_41 [1] : vector<1x128xf32> to vector<1xf32>
      %49 = vector.shape_cast %48 : vector<1xf32> to vector<1x1xf32>
      %50 = tpu.reciprocal %49 : vector<1x1xf32> -> vector<1x1xf32>
      %c0_42 = arith.constant 0 : index
      %c0_43 = arith.constant 0 : index
      %c0_44 = arith.constant 0 : index
      %51 = vector.load %arg8[%c0_42, %c0_43, %c0_44] : memref<1x1x128xf32, #tpu.memory_space<vmem>>, vector<1x1x128xf32>
      %52 = vector.shape_cast %51 : vector<1x1x128xf32> to vector<1x128xf32>
      %53 = vector.shape_cast %42 : vector<1x128xf32> to vector<1x1x128xf32>
      tpu.vector_store %arg8[%c0_42, %c0_43, %c0_44], %53 {strides = array<i32>} : memref<1x1x128xf32, #tpu.memory_space<vmem>>, vector<1x1x128xf32>,
      %54 = vector.broadcast %50 : vector<1x1xf32> to vector<1x128xf32>
      %55 = arith.mulf %47, %54 : vector<1x128xf32>
      %c0_45 = arith.constant 0 : index
      %c0_46 = arith.constant 0 : index
      %c0_47 = arith.constant 0 : index
      %56 = vector.load %arg9[%c0_45, %c0_46, %c0_47] : memref<1x1x128xf32, #tpu.memory_space<vmem>>, vector<1x1x128xf32>
      %57 = vector.shape_cast %56 : vector<1x1x128xf32> to vector<1x128xf32>
      %58 = vector.shape_cast %55 : vector<1x128xf32> to vector<1x1x128xf32>
      tpu.vector_store %arg9[%c0_45, %c0_46, %c0_47], %58 {strides = array<i32>} : memref<1x1x128xf32, #tpu.memory_space<vmem>>, vector<1x1x128xf32>,
    } else {
    }
    return
  }
  func.func @transform_0(%arg0: i32, %arg1: i32) -> (i32, i32, i32) {
    %c0_i32 = arith.constant 0 : i32
    %c0_i32_0 = arith.constant 0 : i32
    return %arg0, %arg1, %c0_i32 : i32, i32, i32
  }
  func.func @transform_1(%arg0: i32, %arg1: i32) -> (i32, i32, i32) {
    %c1_i32 = arith.constant 1 : i32
    %0 = arith.addi %arg1, %c1_i32 : i32
    %c8_i32 = arith.constant 8 : i32
    %1 = arith.muli %0, %c8_i32 : i32
    %c0_i32 = arith.constant 0 : i32
    %c0_i32_0 = arith.constant 0 : i32
    return %arg0, %1, %c0_i32 : i32, i32, i32
  }
  func.func @transform_2(%arg0: i32, %arg1: i32) -> (i32, i32, i32) {
    %c0_i32 = arith.constant 0 : i32
    %c0_i32_0 = arith.constant 0 : i32
    %c0_i32_1 = arith.constant 0 : i32
    %c0_i32_2 = arith.constant 0 : i32
    return %c0_i32, %c0_i32_0, %c0_i32_1 : i32, i32, i32
  }
  func.func @transform_3(%arg0: i32, %arg1: i32) -> (i32, i32) {
    %c0_i32 = arith.constant 0 : i32
    %c0_i32_0 = arith.constant 0 : i32
    %c0_i32_1 = arith.constant 0 : i32
    return %c0_i32, %c0_i32_0 : i32, i32
  }
  func.func @transform_4(%arg0: i32, %arg1: i32) -> (i32, i32) {
    %c0_i32 = arith.constant 0 : i32
    %c0_i32_0 = arith.constant 0 : i32
    %c0_i32_1 = arith.constant 0 : i32
    return %c0_i32, %c0_i32_0 : i32, i32
  }
  func.func @transform_5(%arg0: i32, %arg1: i32) -> (i32, i32) {
    %c0_i32 = arith.constant 0 : i32
    %c0_i32_0 = arith.constant 0 : i32
    %c0_i32_1 = arith.constant 0 : i32
    return %c0_i32, %c0_i32_0 : i32, i32
  }
  func.func @transform_6(%arg0: i32, %arg1: i32) -> (i32, i32, i32) {
    %c0_i32 = arith.constant 0 : i32
    %c0_i32_0 = arith.constant 0 : i32
    %c0_i32_1 = arith.constant 0 : i32
    return %arg0, %c0_i32, %c0_i32_0 : i32, i32, i32
  }
  func.func @transform_7(%arg0: i32, %arg1: i32) -> (i32, i32, i32) {
    %c0_i32 = arith.constant 0 : i32
    %c0_i32_0 = arith.constant 0 : i32
    %c0_i32_1 = arith.constant 0 : i32
    return %arg0, %c0_i32, %c0_i32_0 : i32, i32, i32
  }
}

</mosaic_0001>

<bundles_post_ra>
// kernel: tpu_custom_call.1
= control target key start
LH: loop header
LB: loop body
LE: loop exit
PB: predicated region body
PF: predicated region fallthrough
CT: control target
= control target key end

     0   :  { %s3071_s0 = inlined_call_operand.vmem [shape: f32[2,288,12], index: 0, kind: input, shape index: {}]   ;;  %s3072_s1 = inlined_call_operand.vmem [shape: f32[2,288,12], index: 1, kind: input, shape index: {}]   ;;  %s3073_s2 = inlined_call_operand.vmem [shape: f32[3,12,128], index: 2, kind: input, shape index: {}]   ;;  %s3074_s3 = inlined_call_operand.vmem [shape: f32[1,128], index: 3, kind: input, shape index: {}]   ;;  %s3075_s4 = inlined_call_operand.vmem [shape: f32[128,128], index: 4, kind: input, shape index: {}]   ;;  %s3076_s5 = inlined_call_operand.vmem [shape: f32[1,128], index: 5, kind: input, shape index: {}]   ;;  %s3077_s6 = inlined_call_operand.hbm [shape: f32[2,1,128], index: 6, kind: output, shape index: {0}]   ;;  %s3078_s7 = inlined_call_operand.hbm [shape: f32[2,1,128], index: 7, kind: output, shape index: {1}]  }
   0x1   :  { %3080 = sst [smem:[#allocation10_spill]] %s3071_s0 }
   0x2   :  { %13 = vsyncpa [#allocation5], 0 }
   0x3   :  { %15 = vsyncpa [#allocation5 + $0x1], 0 }
   0x4   :  { %16 = vsyncpa [#allocation7], 0 }
   0x5   :  { %18 = vsyncpa [#allocation7 + $0x1], 0  ;;  %s2465_s24 = smov 0   ;;  %s2467_s25 = smov 0  }
   0x6   :  { %s2469_s26 = smov 0   ;;  %s2471_s27 = smov 0  }
   0x7   :  { %s2473_s28 = smov 0   ;;  %s2475_s29 = smov 0  }
   0x8 LB: > { %s1813_s30 = sadd.s32 4294967295, %s2419_s29   ;;  %s1814_s8 = sadd.s32 4294967294, %s2419_s29   ;;  %s2419_s29 = sphi %s2475_s29, %s24_s29   ;;  %s2415_s28 = sphi %s2473_s28, %s3089_s28   ;;  %s2411_s27 = sphi %s2471_s27, %s3088_s27   ;;  %s2407_s26 = sphi %s2469_s26, %s3087_s26   ;;  %s2403_s25 = sphi %s2467_s25, %s3086_s25   ;;  %s2399_s24 = sphi %s2465_s24, %s3085_s24  }
   0x9   : > { %s36_s9 = sadd.s32 1, %s2415_s28  ;;  %s187_s10 = sadd.s32 1, %s2407_s26 }
   0xa   : > { %p38_p0 = scmp.ge.s32.totalorder %s36_s9, 2  ;;  %p197_p1 = scmp.ne.s32.totalorder %s2407_s26, %s2403_s25 }
   0xb   : > { %p198_p2 = scmp.eq.s32.totalorder %s1813_s30, 1  ;;  %p203_p3 = scmp.ne.s32.totalorder %s2403_s25, %s2399_s24 }
   0xc   : > { %s3091_s9 = smov (%p38_p0, %s36_s9), 0  ;;  %p204_p5 = scmp.eq.s32.totalorder %s1814_s8, 1 }
   0xd   : > { %p2505_p4 = por %p198_p2, %p197_p1  ;;  %s184_s12 = ssub.s32 %s2415_s28, %s3091_s9 }
   0xe   : > { %p1817_p6 = scmp.ge.s32.totalorder %s2419_s29, 1  ;;  %p185_p7 = scmp.eq.s32.totalorder %s184_s12, 0 }
   0xf   : > { %p2512_p8 = por %p204_p5, %p203_p3  ;;  %p298_p9 = scmp.lt.s32.totalorder %s2419_s29, 3 }
  0x10   : > { %s2518_s14 = scalar_select %p185_p7, %s2407_s26, %s187_s10  }
  0x11   : > { %p299_p10 = pnand %p1817_p6, %p298_p9 }
  0x12   : > { %p357_p11 = scmp.lt.s32.totalorder (!%p299_p10), %s2411_s27, 1  ;;  %s3083_s0 = sld [smem:[#allocation10_spill]] (!%p299_p10) }
  0x13   : > { %302 = sbr.rel (%p299_p10) target bundleno = 887 (0x377), region = 44  ;;  %s3005_s18 = sand.u32 (!%p299_p10), 1, %s2403_s25  }
  0x14   : > { %s345_s21 = scalar_lea.vmem (!%p299_p10), [#allocation4], %s3005_s18  ;;  %s2423_s16 = smov (!%p299_p10), [#allocation4]  }
  0x15   : > { %s1685_s10 = sshll.u32 (!%p299_p10), %s345_s21, 4  ;;  %s2317_s17 = sshll.u32 (!%p299_p10), %s2423_s16, 4  ;;  %s1686_s10 = int_to_ptr.vmem [resolvable:$true] %s1685_s10  ;;  %s2318_s17 = int_to_ptr.vmem [resolvable:$false] %s2317_s17 }
  0x16   : > { %s2313_s15 = scalar_lea.vmem (!%p299_p10), %s1686_s10, 16  ;;  %p2320_p1 = scmp.lt.s32.totalorder (!%p299_p10), %s1686_s10, %s2318_s17 }
  0x17   : > { %p2314_p12 = scmp.ne.s32.totalorder (!%p299_p10), %s1686_s10, %s2313_s15 }
  0x18   : > { %v1821_v0 = vld [vmem:[%s3073_s2 + $0x18] sm:$0xf]  ;;  %vm597_vm0 = vcmask 1043456   ;;  %v1820_v1 = vld [vmem:[%s3073_s2 + $0x10] sm:$0xff]  ;;  %s2532_s19 = scalar_select %p357_p11, %s2411_s27, 1  ;;  %vm421_vm1 = vcmask 97280  }
  0x19   : > { %2049 = vmatprep.subr.msk.mxu0 %vm597_vm0, %v1821_v0  ;;  %2240 = vmatprep.subr.msk.mxu1 %vm597_vm0, %v1821_v0  ;;  %v2537_v2 = vld [vmem:[%s3073_s2 + $0x28] sm:$0xf]  ;;  %v1888_v34 = vld [vmem:[%s3073_s2 + $0x20] sm:$0xff]  ;;  %vm2422_vm2 = vmmov 0   ;;  %vm1654_vm3 = vcmask 1040384   ;;  %p2315_p13 = pnand %p2314_p12, %p2505_p4 }
  0x1a   : > { %2050 = vmatpush3.msk.msra.mxu0 %vm597_vm0, %v1821_v0  ;;  %2242 = vmatpush3.msk.msra.mxu1 %vm597_vm0, %v1821_v0  ;;  %v2542_v3 = vld [vmem:[%s3073_s2 + $0x8] sm:$0xf]  ;;  %s2244_s30 = smul.u32 288, %s2532_s19  ;;  %v494_v35 = vld [vmem:[%s3073_s2] sm:$0xff] }
  0x1b   : > { %2051 = vmatprep.subr.mxu0 %v1820_v1  ;;  %2241 = vmatprep.subr.mxu1 %v1820_v1  ;;  %p2316_p0 = pneg %p2315_p13 }
  0x1c   : > { %2052 = vmatpush3.msra.mxu0 %v1820_v1  ;;  %2243 = vmatpush3.msra.mxu1 %v1820_v1  ;;  %s2554_s12 = scalar_lea.vmem %s3083_s0, %s2244_s30  ;;  %s1929_s20 = sadd.s32 256, %s2244_s30 }
  0x1d   : > { %2153 = vmatprep.subr.msk.mxu0 %vm597_vm0, %v2537_v2  ;;  %2101 = vmatprep.subr.msk.mxu1 %vm597_vm0, %v2542_v3  ;;  %v391_v4 = vld [vmem:[%s2554_s12 + $0x10] sm:$0xff]  ;;  %v409_v5 = vld [vmem:[%s2554_s12 + $0xa0] sm:$0xff]  ;;  %v392_v6 = vld [vmem:[%s2554_s12 + $0x18] sm:$0xff]  ;;  %s2651_s22 = scalar_lea.vmem %s3072_s1, %s1929_s20  ;;  %s2319_s20 = scalar_lea.vmem %s2318_s17, 32 }
  0x1e   : > { %424 = vst.msk [vmem:[#allocation2 + $0x10] sm:$0xff] %vm421_vm1, %v391_v4  ;;  %442 = vst.msk [vmem:[#allocation2 + $0xa0] sm:$0xff] %vm421_vm1, %v409_v5  ;;  %v410_v7 = vld [vmem:[%s2554_s12 + $0xa8] sm:$0xff]  ;;  %v393_v8 = vld [vmem:[%s2554_s12 + $0x20] sm:$0xff]  ;;  %p2321_p2 = scmp.lt.s32.totalorder %s2319_s20, %s2313_s15 }
  0x1f   : > { %425 = vst.msk [vmem:[#allocation2 + $0x18] sm:$0xff] %vm421_vm1, %v392_v6  ;;  %v411_v9 = vld [vmem:[%s2554_s12 + $0xb0] sm:$0xff]  ;;  %443 = vst.msk [vmem:[#allocation2 + $0xa8] sm:$0xff] %vm421_vm1, %v410_v7  ;;  %v394_v10 = vld [vmem:[%s2554_s12 + $0x28] sm:$0xff] }
  0x20   : > { %426 = vst.msk [vmem:[#allocation2 + $0x20] sm:$0xff] %vm421_vm1, %v393_v8  ;;  %444 = vst.msk [vmem:[#allocation2 + $0xb0] sm:$0xff] %vm421_vm1, %v411_v9  ;;  %v412_v11 = vld [vmem:[%s2554_s12 + $0xb8] sm:$0xff]  ;;  %v395_v12 = vld [vmem:[%s2554_s12 + $0x30] sm:$0xff]  ;;  %p2322_p3 = por %p2321_p2, %p2320_p1 }
  0x21   : > { %427 = vst.msk [vmem:[#allocation2 + $0x28] sm:$0xff] %vm421_vm1, %v394_v10  ;;  %445 = vst.msk [vmem:[#allocation2 + $0xb8] sm:$0xff] %vm421_vm1, %v412_v11  ;;  %v413_v13 = vld [vmem:[%s2554_s12 + $0xc0] sm:$0xff]  ;;  %v396_v14 = vld [vmem:[%s2554_s12 + $0x38] sm:$0xff] }
  0x22   : > { %428 = vst.msk [vmem:[#allocation2 + $0x30] sm:$0xff] %vm421_vm1, %v395_v12  ;;  %v414_v15 = vld [vmem:[%s2554_s12 + $0xc8] sm:$0xff]  ;;  %446 = vst.msk [vmem:[#allocation2 + $0xc0] sm:$0xff] %vm421_vm1, %v413_v13  ;;  %v397_v16 = vld [vmem:[%s2554_s12 + $0x40] sm:$0xff]  ;;  %p2323_p5 = pnand %p2322_p3, %p2316_p0 }
  0x23   : > { %429 = vst.msk [vmem:[#allocation2 + $0x38] sm:$0xff] %vm421_vm1, %v396_v14  ;;  %447 = vst.msk [vmem:[#allocation2 + $0xc8] sm:$0xff] %vm421_vm1, %v414_v15  ;;  %v415_v17 = vld [vmem:[%s2554_s12 + $0xd0] sm:$0xff]  ;;  %v398_v18 = vld [vmem:[%s2554_s12 + $0x48] sm:$0xff]  ;;  %v2421_v15 = vmov 0.0  }
  0x24   : > { %430 = vst.msk [vmem:[#allocation2 + $0x40] sm:$0xff] %vm421_vm1, %v397_v16  ;;  %448 = vst.msk [vmem:[#allocation2 + $0xd0] sm:$0xff] %vm421_vm1, %v415_v17  ;;  %v416_v19 = vld [vmem:[%s2554_s12 + $0xd8] sm:$0xff]  ;;  %v399_v20 = vld [vmem:[%s2554_s12 + $0x50] sm:$0xff] }
  0x25   : > { %431 = vst.msk [vmem:[#allocation2 + $0x48] sm:$0xff] %vm421_vm1, %v398_v18  ;;  %v417_v21 = vld [vmem:[%s2554_s12 + $0xe0] sm:$0xff]  ;;  %449 = vst.msk [vmem:[#allocation2 + $0xd8] sm:$0xff] %vm421_vm1, %v416_v19  ;;  %v400_v22 = vld [vmem:[%s2554_s12 + $0x58] sm:$0xff] }
  0x26   : > { %432 = vst.msk [vmem:[#allocation2 + $0x50] sm:$0xff] %vm421_vm1, %v399_v20  ;;  %450 = vst.msk [vmem:[#allocation2 + $0xe0] sm:$0xff] %vm421_vm1, %v417_v21  ;;  %v418_v23 = vld [vmem:[%s2554_s12 + $0xe8] sm:$0xff]  ;;  %v401_v24 = vld [vmem:[%s2554_s12 + $0x60] sm:$0xff] }
  0x27   : > { %433 = vst.msk [vmem:[#allocation2 + $0x58] sm:$0xff] %vm421_vm1, %v400_v22  ;;  %451 = vst.msk [vmem:[#allocation2 + $0xe8] sm:$0xff] %vm421_vm1, %v418_v23  ;;  %v419_v25 = vld [vmem:[%s2554_s12 + $0xf0] sm:$0xff]  ;;  %v402_v26 = vld [vmem:[%s2554_s12 + $0x68] sm:$0xff] }
  0x28   : > { %434 = vst.msk [vmem:[#allocation2 + $0x60] sm:$0xff] %vm421_vm1, %v401_v24  ;;  %v420_v27 = vld [vmem:[%s2554_s12 + $0xf8] sm:$0xff]  ;;  %v2601_v28 = vld [vmem:[#allocation2 + $0x10] sm:$0xff]  ;;  %v2603_v29 = vld [vmem:[#allocation2 + $0xa0] sm:$0xff] }
  0x29   : > { %v2605_v30 = vld [vmem:[#allocation2 + $0x18] sm:$0xff]  ;;  %452 = vst.msk [vmem:[#allocation2 + $0xf0] sm:$0xff] %vm421_vm1, %v419_v25  ;;  %435 = vst.msk [vmem:[#allocation2 + $0x68] sm:$0xff] %vm421_vm1, %v402_v26  ;;  %2053 = vmatprep.mubr.msk.f32.mxu0 %vm421_vm1, %v2601_v28  ;;  %2080 = vmatprep.mubr.msk.f32.mxu1 %vm421_vm1, %v2603_v29  ;;  %v2614_v31 = vld [vmem:[#allocation2 + $0xa8] sm:$0xff] }
  0x2a   : > { %453 = vst.msk [vmem:[#allocation2 + $0xf8] sm:$0xff] %vm421_vm1, %v420_v27  ;;  %v2616_v32 = vld [vmem:[#allocation2 + $0x20] sm:$0xff]  ;;  %v2618_v33 = vld [vmem:[#allocation2 + $0xb0] sm:$0xff]  ;;  %2054 = vmatmul.mubr.msk.f32.vlgmr.msra.gmra.mxu0 %vm421_vm1, %v2605_v30  ;;  %2081 = vmatmul.mubr.msk.f32.vlgmr.msra.gmra.mxu1 %vm421_vm1, %v2614_v31  ;;  %v2636_v36 = vld [vmem:[#allocation2 + $0x28] sm:$0xff] }
  0x2b   : > { %2154 = vmatpush3.msk.msra.mxu0 %vm597_vm0, %v2537_v2  ;;  %2056 = vmatprep.mubr.msk.f32.mxu0 %vm421_vm1, %v2616_v32  ;;  %v2638_v37 = vld [vmem:[#allocation2 + $0xb8] sm:$0xff]  ;;  %v2644_v38 = vld [vmem:[#allocation2 + $0x30] sm:$0xff]  ;;  %v2646_v39 = vld [vmem:[#allocation2 + $0xc0] sm:$0xff]  ;;  %388 = vst [vmem:[#allocation3] sm:$0x1] %v2421_v15 }
  0x2c   : > { %2083 = vmatprep.mubr.msk.f32.mxu1 %vm421_vm1, %v2618_v33  ;;  %2102 = vmatpush3.msk.msra.mxu1 %vm597_vm0, %v2542_v3  ;;  %v2657_v40 = vld [vmem:[#allocation2 + $0x38] sm:$0xff]  ;;  %v2663_v41 = vld [vmem:[#allocation2 + $0xc8] sm:$0xff]  ;;  %v2665_v42 = vld [vmem:[#allocation2 + $0x40] sm:$0xff] }
  0x2d   : > { %2155 = vmatprep.subr.mxu0 %v1888_v34  ;;  %2103 = vmatprep.subr.mxu1 %v494_v35  ;;  %v2667_v43 = vld [vmem:[#allocation2 + $0xd0] sm:$0xff]  ;;  %v454_v45 = vld [vmem:[%s2651_s22] sm:$0xff]  ;;  %v404_v46 = vld [vmem:[%s2554_s12 + $0x78] sm:$0xff] }
  0x2e   : > { %2057 = vmatmul.mubr.msk.f32.gmra.mxu0 %vm421_vm1, %v2636_v36  ;;  %2084 = vmatmul.mubr.msk.f32.gmra.mxu1 %vm421_vm1, %v2638_v37  ;;  %v403_v44 = vld [vmem:[%s2554_s12 + $0x70] sm:$0xff]  ;;  %v2672_v47 = vld [vmem:[#allocation2 + $0x48] sm:$0xff]  ;;  %v2674_v48 = vld [vmem:[#allocation2 + $0xd8] sm:$0xff]  ;;  %458 = vst.msk [vmem:[#allocation2 + $0x100] sm:$0xff] %vm421_vm1, %v454_v45 }
  0x2f   : > { %2059 = vmatprep.mubr.msk.f32.mxu0 %vm421_vm1, %v2644_v38  ;;  %2086 = vmatprep.mubr.msk.f32.mxu1 %vm421_vm1, %v2646_v39  ;;  %436 = vst.msk [vmem:[#allocation2 + $0x70] sm:$0xff] %vm421_vm1, %v403_v44  ;;  %437 = vst.msk [vmem:[#allocation2 + $0x78] sm:$0xff] %vm421_vm1, %v404_v46  ;;  %v455_v49 = vld [vmem:[%s2651_s22 + $0x8] sm:$0xff]  ;;  %v405_v50 = vld [vmem:[%s2554_s12 + $0x80] sm:$0xff] }
  0x30   : > { %2156 = vmatpush3.msra.mxu0 %v1888_v34  ;;  %2104 = vmatpush3.msra.mxu1 %v494_v35  ;;  %v389_v51 = vld [vmem:[%s2554_s12] sm:$0xff]  ;;  %459 = vst.msk [vmem:[#allocation2 + $0x108] sm:$0xff] %vm421_vm1, %v455_v49  ;;  %438 = vst.msk [vmem:[#allocation2 + $0x80] sm:$0xff] %vm421_vm1, %v405_v50  ;;  %v406_v52 = vld [vmem:[%s2554_s12 + $0x88] sm:$0xff] }
  0x31   : > { %422 = vst.msk [vmem:[#allocation2] sm:$0xff] %vm421_vm1, %v389_v51  ;;  %v390_v53 = vld [vmem:[%s2554_s12 + $0x8] sm:$0xff]  ;;  %v407_v54 = vld [vmem:[%s2554_s12 + $0x90] sm:$0xff]  ;;  %439 = vst.msk [vmem:[#allocation2 + $0x88] sm:$0xff] %vm421_vm1, %v406_v52  ;;  %2205 = vmatprep.subr.mxu1 %v2421_v15 }
  0x32   : > { %2060 = vmatmul.mubr.msk.f32.gmra.mxu0 %vm421_vm1, %v2657_v40  ;;  %2087 = vmatmul.mubr.msk.f32.gmra.mxu1 %vm421_vm1, %v2663_v41  ;;  %423 = vst.msk [vmem:[#allocation2 + $0x8] sm:$0xff] %vm421_vm1, %v390_v53  ;;  %440 = vst.msk [vmem:[#allocation2 + $0x90] sm:$0xff] %vm421_vm1, %v407_v54  ;;  %v408_v55 = vld [vmem:[%s2554_s12 + $0x98] sm:$0xff]  ;;  %v456_v56 = vld [vmem:[%s2651_s22 + $0x10] sm:$0xff]  ;;  %s1669_s12 = scalar_lea.sflag [#allocation5], %s3005_s18 }
  0x33   : > { %2062 = vmatprep.mubr.msk.f32.mxu0 %vm421_vm1, %v2665_v42  ;;  %2089 = vmatprep.mubr.msk.f32.mxu1 %vm421_vm1, %v2667_v43  ;;  %v457_v57 = vld [vmem:[%s2651_s22 + $0x18] sm:$0xff]  ;;  %v472_v58 = vld [vmem:[#allocation2 + $0x50] sm:$0xff]  ;;  %v2702_v59 = vld [vmem:[#allocation2 + $0xe0] sm:$0xff]  ;;  %441 = vst.msk [vmem:[#allocation2 + $0x98] sm:$0xff] %vm421_vm1, %v408_v55  ;;  %s3079_s22 = sshll.u32 %s2411_s27, 4 }
  0x34   : > { %460 = vst.msk [vmem:[#allocation2 + $0x110] sm:$0xff] %vm421_vm1, %v456_v56  ;;  %461 = vst.msk [vmem:[#allocation2 + $0x118] sm:$0xff] %vm421_vm1, %v457_v57  ;;  %v473_v60 = vld [vmem:[#allocation2 + $0x58] sm:$0xff]  ;;  %v2714_v61 = vld [vmem:[#allocation2 + $0xe8] sm:$0xff]  ;;  %s1683_s8 = scalar_lea.hbm %s3077_s6, %s3079_s22 }
  0x35   : > { %v474_v62 = vld [vmem:[#allocation2 + $0x60] sm:$0xff]  ;;  %v2716_v63 = vld [vmem:[#allocation2 + $0xf0] sm:$0xff]  ;;  %v475_v0 = vld [vmem:[#allocation2 + $0x68] sm:$0xff] }
  0x36   : > { %2063 = vmatmul.mubr.msk.f32.gmra.mxu0 %vm421_vm1, %v2672_v47  ;;  %2090 = vmatmul.mubr.msk.f32.gmra.mxu1 %vm421_vm1, %v2674_v48  ;;  %v2724_v1 = vld [vmem:[#allocation2 + $0xf8] sm:$0xff]  ;;  %v476_v2 = vld [vmem:[#allocation2 + $0x70] sm:$0xff]  ;;  %v2726_v3 = vld [vmem:[#allocation2 + $0x100] sm:$0xff] }
  0x37   : > { %2065 = vmatprep.mubr.msk.f32.mxu0 %vm421_vm1, %v472_v58  ;;  %2092 = vmatprep.mubr.msk.f32.mxu1 %vm421_vm1, %v2702_v59  ;;  %v477_v4 = vld [vmem:[#allocation2 + $0x78] sm:$0xff]  ;;  %v2734_v5 = vld [vmem:[#allocation2 + $0x108] sm:$0xff]  ;;  %v478_v6 = vld [vmem:[#allocation2 + $0x80] sm:$0xff] }
  0x38   : > { %v462_v7 = vld [vmem:[#allocation2] sm:$0xff]  ;;  %v479_v8 = vld [vmem:[#allocation2 + $0x88] sm:$0xff]  ;;  %v1582_v14 = vld [vmem:[%s3075_s4 + $0x78] sm:$0xff] }
  0x39   : > { %v463_v9 = vld [vmem:[#allocation2 + $0x8] sm:$0xff]  ;;  %v480_v10 = vld [vmem:[#allocation2 + $0x90] sm:$0xff]  ;;  %v1579_v18 = vld [vmem:[%s3075_s4 + $0x60] sm:$0xff] }
  0x3a   : > { %2066 = vmatmul.mubr.msk.f32.gmra.mxu0 %vm421_vm1, %v473_v60  ;;  %2093 = vmatmul.mubr.msk.f32.gmra.mxu1 %vm421_vm1, %v2714_v61  ;;  %v481_v11 = vld [vmem:[#allocation2 + $0x98] sm:$0xff]  ;;  %v1581_v16 = vld [vmem:[%s3075_s4 + $0x70] sm:$0xff]  ;;  %v1580_v17 = vld [vmem:[%s3075_s4 + $0x68] sm:$0xff] }
  0x3b   : > { %2068 = vmatprep.mubr.msk.f32.mxu0 %vm421_vm1, %v474_v62  ;;  %2095 = vmatprep.mubr.msk.f32.mxu1 %vm421_vm1, %v2716_v63  ;;  %v1090_v12 = vld [vmem:[#allocation2 + $0x110] sm:$0xff]  ;;  %v1091_v13 = vld [vmem:[#allocation2 + $0x118] sm:$0xff]  ;;  %v1576_v21 = vld [vmem:[%s3075_s4 + $0x48] sm:$0xff] }
  0x3c   : > { %v1578_v19 = vld [vmem:[%s3075_s4 + $0x58] sm:$0xff]  ;;  %v1577_v20 = vld [vmem:[%s3075_s4 + $0x50] sm:$0xff]  ;;  %v1575_v22 = vld [vmem:[%s3075_s4 + $0x40] sm:$0xff] }
  0x3d   : > { %v1574_v23 = vld [vmem:[%s3075_s4 + $0x38] sm:$0xff]  ;;  %v1573_v24 = vld [vmem:[%s3075_s4 + $0x30] sm:$0xff]  ;;  %v1572_v25 = vld [vmem:[%s3075_s4 + $0x28] sm:$0xff] }
  0x3e   : > { %2069 = vmatmul.mubr.msk.f32.gmra.mxu0 %vm421_vm1, %v475_v0  ;;  %2096 = vmatmul.mubr.msk.f32.gmra.mxu1 %vm421_vm1, %v2724_v1  ;;  %v1571_v26 = vld [vmem:[%s3075_s4 + $0x20] sm:$0xff]  ;;  %v1570_v27 = vld [vmem:[%s3075_s4 + $0x18] sm:$0xff] }
  0x3f   : > { %2071 = vmatprep.mubr.msk.f32.mxu0 %vm421_vm1, %v476_v2  ;;  %2098 = vmatprep.mubr.msk.f32.mxu1 %vm421_vm1, %v2726_v3  ;;  %v1567_v34 = vld [vmem:[%s3075_s4] sm:$0xff] }
  0x42   : > { %2072 = vmatmul.mubr.msk.f32.gmra.mxu0 %vm421_vm1, %v477_v4  ;;  %2099 = vmatmul.mubr.msk.f32.gmra.mxu1 %vm421_vm1, %v2734_v5 }
  0x43   : > { %2074 = vmatprep.mubr.msk.f32.mxu0 %vm421_vm1, %v478_v6  ;;  %2105 = vmatprep.mubr.msk.f32.mxu1 %vm421_vm1, %v462_v7 }
  0x46   : > { %2075 = vmatmul.mubr.msk.f32.gmra.mxu0 %vm421_vm1, %v479_v8  ;;  %2106 = vmatmul.mubr.msk.f32.vlgmr.msra.gmra.mxu1 %vm421_vm1, %v463_v9 }
  0x47   : > { %2077 = vmatprep.mubr.msk.f32.mxu0 %vm421_vm1, %v480_v10  ;;  %2108 = vmatprep.mubr.msk.f32.mxu1 %vm421_vm1, %v2601_v28  ;;  %v1569_v28 = vld [vmem:[%s3075_s4 + $0x10] sm:$0xff] }
  0x48   : > { %2206 = vmatpush3.msra.mxu1 %v1582_v14 }
  0x49   : > { %2207 = vmatprep.subr.mxu1 %v2421_v15 }
  0x4a   : > { %2078 = vmatmul.mubr.msk.f32.gmra.mxu0 %vm421_vm1, %v481_v11  ;;  %2109 = vmatmul.mubr.msk.f32.gmra.mxu1 %vm421_vm1, %v2605_v30 }
  0x4b   : > { %2111 = vmatprep.mubr.msk.f32.mxu1 %vm421_vm1, %v2616_v32  ;;  %2157 = vmatprep.mubr.msk.f32.mxu0 %vm421_vm1, %v2616_v32 }
  0x4c   : > { %2208 = vmatpush3.msra.mxu1 %v1581_v16 }
  0x4d   : > { %2209 = vmatprep.subr.mxu1 %v2421_v15 }
  0x4e   : > { %2112 = vmatmul.mubr.msk.f32.gmra.mxu1 %vm421_vm1, %v2636_v36  ;;  %2158 = vmatmul.mubr.msk.f32.vlgmr.msra.gmra.mxu0 %vm421_vm1, %v2636_v36 }
  0x4f   : > { %2114 = vmatprep.mubr.msk.f32.mxu1 %vm421_vm1, %v2644_v38  ;;  %2160 = vmatprep.mubr.msk.f32.mxu0 %vm421_vm1, %v2644_v38 }
  0x50   : > { %2210 = vmatpush3.msra.mxu1 %v1580_v17 }
  0x51   : > { %2211 = vmatprep.subr.mxu1 %v2421_v15 }
  0x52   : > { %2115 = vmatmul.mubr.msk.f32.gmra.mxu1 %vm421_vm1, %v2657_v40  ;;  %2161 = vmatmul.mubr.msk.f32.gmra.mxu0 %vm421_vm1, %v2657_v40 }
  0x53   : > { %2117 = vmatprep.mubr.msk.f32.mxu1 %vm421_vm1, %v2665_v42  ;;  %2163 = vmatprep.mubr.msk.f32.mxu0 %vm421_vm1, %v2665_v42 }
  0x54   : > { %2212 = vmatpush3.msra.mxu1 %v1579_v18 }
  0x55   : > { %2213 = vmatprep.subr.mxu1 %v2421_v15 }
  0x56   : > { %2118 = vmatmul.mubr.msk.f32.gmra.mxu1 %vm421_vm1, %v2672_v47  ;;  %2164 = vmatmul.mubr.msk.f32.gmra.mxu0 %vm421_vm1, %v2672_v47 }
  0x57   : > { %2120 = vmatprep.mubr.msk.f32.mxu1 %vm421_vm1, %v472_v58  ;;  %2166 = vmatprep.mubr.msk.f32.mxu0 %vm421_vm1, %v472_v58 }
  0x58   : > { %2214 = vmatpush3.msra.mxu1 %v1578_v19 }
  0x59   : > { %2215 = vmatprep.subr.mxu1 %v2421_v15 }
  0x5a   : > { %2121 = vmatmul.mubr.msk.f32.gmra.mxu1 %vm421_vm1, %v473_v60  ;;  %2167 = vmatmul.mubr.msk.f32.gmra.mxu0 %vm421_vm1, %v473_v60 }
  0x5b   : > { %2123 = vmatprep.mubr.msk.f32.mxu1 %vm421_vm1, %v474_v62  ;;  %2169 = vmatprep.mubr.msk.f32.mxu0 %vm421_vm1, %v474_v62 }
  0x5c   : > { %2216 = vmatpush3.msra.mxu1 %v1577_v20 }
  0x5d   : > { %2217 = vmatprep.subr.mxu1 %v2421_v15 }
  0x5e   : > { %2124 = vmatmul.mubr.msk.f32.gmra.mxu1 %vm421_vm1, %v475_v0  ;;  %2170 = vmatmul.mubr.msk.f32.gmra.mxu0 %vm421_vm1, %v475_v0 }
  0x5f   : > { %2126 = vmatprep.mubr.msk.f32.mxu1 %vm421_vm1, %v476_v2  ;;  %2172 = vmatprep.mubr.msk.f32.mxu0 %vm421_vm1, %v476_v2 }
  0x60   : > { %2218 = vmatpush3.msra.mxu1 %v1576_v21 }
  0x61   : > { %2219 = vmatprep.subr.mxu1 %v2421_v15 }
  0x62   : > { %2127 = vmatmul.mubr.msk.f32.gmra.mxu1 %vm421_vm1, %v477_v4  ;;  %2173 = vmatmul.mubr.msk.f32.gmra.mxu0 %vm421_vm1, %v477_v4 }
  0x63   : > { %2129 = vmatprep.mubr.msk.f32.mxu1 %vm421_vm1, %v478_v6  ;;  %2175 = vmatprep.mubr.msk.f32.mxu0 %vm421_vm1, %v478_v6 }
  0x64   : > { %2220 = vmatpush3.msra.mxu1 %v1575_v22 }
  0x65   : > { %2221 = vmatprep.subr.mxu1 %v2421_v15 }
  0x66   : > { %2130 = vmatmul.mubr.msk.f32.gmra.mxu1 %vm421_vm1, %v479_v8  ;;  %2176 = vmatmul.mubr.msk.f32.gmra.mxu0 %vm421_vm1, %v479_v8  ;;  %v2946_v8 = vld [vmem:[%s3074_s3] ss:$0 sm:$0xff] }
  0x67   : > { %2132 = vmatprep.mubr.msk.f32.mxu1 %vm421_vm1, %v480_v10  ;;  %2178 = vmatprep.mubr.msk.f32.mxu0 %vm421_vm1, %v480_v10 }
  0x68   : > { %2222 = vmatpush3.msra.mxu1 %v1574_v23 }
  0x69   : > { %2223 = vmatprep.subr.mxu1 %v2421_v15 }
  0x6a   : > { %2133 = vmatmul.mubr.msk.f32.gmra.mxu1 %vm421_vm1, %v481_v11  ;;  %2179 = vmatmul.mubr.msk.f32.gmra.mxu0 %vm421_vm1, %v481_v11 }
  0x6b   : > { %2135 = vmatprep.mubr.msk.f32.mxu1 %vm421_vm1, %v2603_v29  ;;  %2181 = vmatprep.mubr.msk.f32.mxu0 %vm421_vm1, %v2603_v29 }
  0x6c   : > { %2224 = vmatpush3.msra.mxu1 %v1573_v24 }
  0x6d   : > { %2225 = vmatprep.subr.mxu1 %v2421_v15 }
  0x6e   : > { %2136 = vmatmul.mubr.msk.f32.gmra.mxu1 %vm421_vm1, %v2614_v31  ;;  %2182 = vmatmul.mubr.msk.f32.gmra.mxu0 %vm421_vm1, %v2614_v31  ;;  %v1568_v31 = vld [vmem:[%s3075_s4 + $0x8] sm:$0xff] }
  0x6f   : > { %2138 = vmatprep.mubr.msk.f32.mxu1 %vm421_vm1, %v2618_v33  ;;  %2184 = vmatprep.mubr.msk.f32.mxu0 %vm421_vm1, %v2618_v33 }
  0x70   : > { %2226 = vmatpush3.msra.mxu1 %v1572_v25 }
  0x71   : > { %2227 = vmatprep.subr.mxu1 %v2421_v15 }
  0x72   : > { %2139 = vmatmul.mubr.msk.f32.gmra.mxu1 %vm421_vm1, %v2638_v37  ;;  %2185 = vmatmul.mubr.msk.f32.gmra.mxu0 %vm421_vm1, %v2638_v37 }
  0x73   : > { %2141 = vmatprep.mubr.msk.f32.mxu1 %vm421_vm1, %v2646_v39  ;;  %2187 = vmatprep.mubr.msk.f32.mxu0 %vm421_vm1, %v2646_v39 }
  0x74   : > { %2228 = vmatpush3.msra.mxu1 %v1571_v26 }
  0x75   : > { %2229 = vmatprep.subr.mxu1 %v2421_v15 }
  0x76   : > { %2142 = vmatmul.mubr.msk.f32.gmra.mxu1 %vm421_vm1, %v2663_v41  ;;  %2188 = vmatmul.mubr.msk.f32.gmra.mxu0 %vm421_vm1, %v2663_v41 }
  0x77   : > { %2144 = vmatprep.mubr.msk.f32.mxu1 %vm421_vm1, %v2667_v43  ;;  %2190 = vmatprep.mubr.msk.f32.mxu0 %vm421_vm1, %v2667_v43 }
  0x78   : > { %2230 = vmatpush3.msra.mxu1 %v1570_v27 }
  0x79   : > { %2231 = vmatprep.subr.mxu1 %v2421_v15 }
  0x7a   : > { %2145 = vmatmul.mubr.msk.f32.gmra.mxu1 %vm421_vm1, %v2674_v48  ;;  %2191 = vmatmul.mubr.msk.f32.gmra.mxu0 %vm421_vm1, %v2674_v48 }
  0x7b   : > { %2147 = vmatprep.mubr.msk.f32.mxu1 %vm421_vm1, %v2702_v59  ;;  %2193 = vmatprep.mubr.msk.f32.mxu0 %vm421_vm1, %v2702_v59 }
  0x7c   : > { %2232 = vmatpush3.msra.mxu1 %v1569_v28 }
  0x7d   : > { %2233 = vmatprep.subr.mxu1 %v2421_v15 }
  0x7e   : > { %2148 = vmatmul.mubr.msk.f32.gmra.mxu1 %vm421_vm1, %v2714_v61  ;;  %2194 = vmatmul.mubr.msk.f32.gmra.mxu0 %vm421_vm1, %v2714_v61 }
  0x7f   : > { %2150 = vmatprep.mubr.msk.f32.mxu1 %vm421_vm1, %v2716_v63  ;;  %2196 = vmatprep.mubr.msk.f32.mxu0 %vm421_vm1, %v2716_v63 }
  0x80   : > { %2234 = vmatpush3.msra.mxu1 %v1568_v31 }
  0x81   : > { %2235 = vmatprep.subr.mxu1 %v2421_v15 }
  0x82   : > { %2151 = vmatmul.mubr.msk.f32.gmra.mxu1 %vm421_vm1, %v2724_v1  ;;  %2197 = vmatmul.mubr.msk.f32.gmra.mxu0 %vm421_vm1, %v2724_v1 }
  0x83   : > { %2199 = vmatprep.mubr.msk.f32.mxu0 %vm421_vm1, %v2726_v3  ;;  %2237 = vmatprep.mubr.msk.f32.mxu1 %vm2422_vm2, %v2421_v15 }
  0x84   : > { %2236 = vmatpush3.msra.mxu1 %v1567_v34 }
  0x86   : > { %2200 = vmatmul.mubr.msk.f32.gmra.mxu0 %vm421_vm1, %v2734_v5 }
  0x87   : > { %2202 = vmatprep.mubr.msk.f32.mxu0 %vm421_vm1, %v1090_v12 }
  0x8a   : > { %2203 = vmatmul.mubr.msk.f32.gmra.mxu0 %vm421_vm1, %v1091_v13 }
  0xea   : > { %v2055_v29 = vpop.f32.mrf.mxu0  ;;  %v2889_v30 = vpop.f32.mrf.mxu1 }
  0xec   : > { %v667_v32 = vpop.f32.mrf.mxu0  ;;  %v2894_v33 = vpop.f32.mrf.mxu1 }
  0xee   : > { %v2058_v35 = vpop.f32.mrf.mxu0  ;;  %v2899_v36 = vpop.f32.mrf.mxu1 }
  0xf0   : > { %v677_v37 = vpop.f32.mrf.mxu0  ;;  %v2901_v38 = vpop.f32.mrf.mxu1 }
  0xf2   : > { %v2061_v39 = vpop.f32.mrf.mxu0  ;;  %v2903_v40 = vpop.f32.mrf.mxu1 }
  0xf4   : > { %v687_v41 = vpop.f32.mrf.mxu0  ;;  %v2905_v42 = vpop.f32.mrf.mxu1 }
  0xf6   : > { %v2064_v43 = vpop.f32.mrf.mxu0  ;;  %v2907_v44 = vpop.f32.mrf.mxu1 }
  0xf8   : > { %v697_v45 = vpop.f32.mrf.mxu0  ;;  %v2909_v46 = vpop.f32.mrf.mxu1 }
  0xfa   : > { %v2911_v47 = vpop.f32.mrf.mxu0  ;;  %v2913_v48 = vpop.f32.mrf.mxu1 }
  0xfc   : > { %v2915_v49 = vpop.f32.mrf.mxu0  ;;  %v2917_v50 = vpop.f32.mrf.mxu1 }
  0xfe   : > { %v2919_v51 = vpop.f32.mrf.mxu0  ;;  %v2921_v52 = vpop.f32.mrf.mxu1 }
 0x100   : > { %v2923_v53 = vpop.f32.mrf.mxu0  ;;  %v2925_v54 = vpop.f32.mrf.mxu1 }
 0x102   : > { %v2927_v55 = vpop.f32.mrf.mxu0  ;;  %v2929_v56 = vpop.f32.mrf.mxu1 }
 0x104   : > { %v2931_v57 = vpop.f32.mrf.mxu0  ;;  %v2933_v58 = vpop.f32.mrf.mxu1 }
 0x106   : > { %v2935_v59 = vpop.f32.mrf.mxu0  ;;  %v2107_v60 = vpop.f32.mrf.mxu1 }
 0x107   : > { %v907_v3 = vadd.f32 %v2107_v60, %v2055_v29 }
 0x108   : > { %v2937_v61 = vpop.f32.mrf.mxu0  ;;  %v901_v62 = vpop.f32.mrf.mxu1 }
 0x109   : > { %v902_v6 = vadd.f32 %v901_v62, %v667_v32 }
 0x10a   : > { %v2939_v63 = vpop.f32.mrf.mxu0  ;;  %v2110_v0 = vpop.f32.mrf.mxu1 }
 0x10b   : > { %v917_v11 = vadd.f32 %v2110_v0, %v2058_v35 }
 0x10c   : > { %v2941_v1 = vpop.f32.mrf.mxu0  ;;  %v911_v2 = vpop.f32.mrf.mxu1 }
 0x10d   : > { %v912_v15 = vadd.f32 %v911_v2, %v677_v37 }
 0x10e   : > { %v2113_v4 = vpop.f32.mrf.mxu1  ;;  %v2159_v5 = vpop.f32.mrf.mxu0 }
 0x10f   : > { %v1420_v7 = vadd.f32 %v2159_v5, %v907_v3  ;;  %v927_v23 = vadd.f32 %v2113_v4, %v2061_v39 }
 0x110   : > { %v921_v9 = vpop.f32.mrf.mxu1  ;;  %v1260_v10 = vpop.f32.mrf.mxu0 }
 0x111   : > { %v1419_v12 = vadd.f32 %v1260_v10, %v902_v6  ;;  %v1459_v16 = vadd.f32 %v2946_v8, %v1420_v7  ;;  %v922_v27 = vadd.f32 %v921_v9, %v687_v41 }
 0x112   : > { %v2116_v13 = vpop.f32.mrf.mxu1  ;;  %v2162_v14 = vpop.f32.mrf.mxu0 }
 0x113   : > { %v1458_v17 = vadd.f32 %v2946_v8, %v1419_v12  ;;  %v1422_v18 = vadd.f32 %v2162_v14, %v917_v11  ;;  %v1491_v26 = vmax.f32 %v1459_v16, 0.0  ;;  %v937_v62 = vadd.f32 %v2116_v13, %v2064_v43 }
 0x114   : > { %v931_v19 = vpop.f32.mrf.mxu1  ;;  %v1270_v20 = vpop.f32.mrf.mxu0 }
 0x115   : > { %v1490_v21 = vmax.f32 %v1458_v17, 0.0  ;;  %v1421_v22 = vadd.f32 %v1270_v20, %v912_v15  ;;  %v1461_v28 = vadd.f32 %v2946_v8, %v1422_v18  ;;  %v932_v41 = vadd.f32 %v931_v19, %v697_v45 }
 0x116   : > { %v2119_v24 = vpop.f32.mrf.mxu1  ;;  %v2165_v25 = vpop.f32.mrf.mxu0 }
 0x117   : > { %v1460_v29 = vadd.f32 %v2946_v8, %v1421_v22  ;;  %v1424_v31 = vadd.f32 %v2165_v25, %v927_v23  ;;  %v1523_v35 = vadd.f32 %v1491_v26, %v1490_v21  ;;  %v1493_v3 = vmax.f32 %v1461_v28, 0.0 }
 0x118   : > { %v941_v32 = vpop.f32.mrf.mxu1  ;;  %v1280_v34 = vpop.f32.mrf.mxu0  ;;  %v947_v12 = vadd.f32 %v2119_v24, %v2911_v47 }
 0x119   : > { %v1492_v37 = vmax.f32 %v1460_v29, 0.0  ;;  %v1423_v60 = vadd.f32 %v1280_v34, %v922_v27  ;;  %v1463_v39 = vadd.f32 %v2946_v8, %v1424_v31  ;;  %v942_v13 = vadd.f32 %v941_v32, %v2915_v49 }
 0x11a   : > { %v2122_v0 = vpop.f32.mrf.mxu1  ;;  %v2168_v2 = vpop.f32.mrf.mxu0 }
 0x11b   : > { %v1524_v5 = vadd.f32 %v1523_v35, %v1492_v37  ;;  %v1462_v4 = vadd.f32 %v2946_v8, %v1423_v60  ;;  %v1426_v6 = vadd.f32 %v2168_v2, %v937_v62  ;;  %v1495_v43 = vmax.f32 %v1463_v39, 0.0 }
 0x11c   : > { %v951_v7 = vpop.f32.mrf.mxu1  ;;  %v1290_v9 = vpop.f32.mrf.mxu0  ;;  %v957_v25 = vadd.f32 %v2122_v0, %v2919_v51 }
 0x11d   : > { %v1494_v10 = vmax.f32 %v1462_v4, 0.0  ;;  %v1525_v11 = vadd.f32 %v1524_v5, %v1493_v3  ;;  %v1425_v14 = vadd.f32 %v1290_v9, %v932_v41  ;;  %v1465_v18 = vadd.f32 %v2946_v8, %v1426_v6 }
 0x11e   : > { %v2125_v15 = vpop.f32.mrf.mxu1  ;;  %v2171_v16 = vpop.f32.mrf.mxu0  ;;  %v952_v27 = vadd.f32 %v951_v7, %v2923_v53 }
 0x11f   : > { %v1526_v17 = vadd.f32 %v1525_v11, %v1494_v10  ;;  %v1464_v20 = vadd.f32 %v2946_v8, %v1425_v14  ;;  %v1428_v21 = vadd.f32 %v2171_v16, %v947_v12  ;;  %v1497_v49 = vmax.f32 %v1465_v18, 0.0 }
 0x120   : > { %v961_v45 = vpop.f32.mrf.mxu1  ;;  %v1300_v19 = vpop.f32.mrf.mxu0  ;;  %v967_v62 = vadd.f32 %v2125_v15, %v2927_v55 }
 0x121   : > { %v1527_v22 = vadd.f32 %v1526_v17, %v1495_v43  ;;  %v1427_v23 = vadd.f32 %v1300_v19, %v942_v13  ;;  %v1496_v26 = vmax.f32 %v1464_v20, 0.0  ;;  %v1467_v31 = vadd.f32 %v2946_v8, %v1428_v21 }
 0x122   : > { %v2128_v47 = vpop.f32.mrf.mxu1  ;;  %v2174_v24 = vpop.f32.mrf.mxu0  ;;  %v962_v3 = vadd.f32 %v961_v45, %v2931_v57 }
 0x123   : > { %v1466_v28 = vadd.f32 %v2946_v8, %v1427_v23  ;;  %v1528_v29 = vadd.f32 %v1527_v22, %v1496_v26  ;;  %v1430_v32 = vadd.f32 %v2174_v24, %v957_v25  ;;  %v1499_v5 = vmax.f32 %v1467_v31, 0.0 }
 0x124   : > { %v971_v34 = vpop.f32.mrf.mxu1  ;;  %v1310_v35 = vpop.f32.mrf.mxu0  ;;  %v977_v11 = vadd.f32 %v2128_v47, %v2935_v59 }
 0x125   : > { %v1498_v37 = vmax.f32 %v1466_v28, 0.0  ;;  %v1429_v60 = vadd.f32 %v1310_v35, %v952_v27  ;;  %v1529_v2 = vadd.f32 %v1528_v29, %v1497_v49  ;;  %v1469_v4 = vadd.f32 %v2946_v8, %v1430_v32 }
 0x126   : > { %v2131_v51 = vpop.f32.mrf.mxu1  ;;  %v2177_v0 = vpop.f32.mrf.mxu0  ;;  %v972_v15 = vadd.f32 %v971_v34, %v2937_v61 }
 0x127   : > { %v1468_v53 = vadd.f32 %v2946_v8, %v1429_v60  ;;  %v1530_v39 = vadd.f32 %v1529_v2, %v1498_v37  ;;  %v1432_v41 = vadd.f32 %v2177_v0, %v967_v62  ;;  %v1501_v16 = vmax.f32 %v1469_v4, 0.0 }
 0x128   : > { %v981_v6 = vpop.f32.mrf.mxu1  ;;  %v1320_v7 = vpop.f32.mrf.mxu0  ;;  %v987_v19 = vadd.f32 %v2131_v51, %v2939_v63 }
 0x129   : > { %v1500_v9 = vmax.f32 %v1468_v53, 0.0  ;;  %v1431_v10 = vadd.f32 %v1320_v7, %v962_v3  ;;  %v1531_v12 = vadd.f32 %v1530_v39, %v1499_v5  ;;  %v1471_v13 = vadd.f32 %v2946_v8, %v1432_v41 }
 0x12a   : > { %v2134_v55 = vpop.f32.mrf.mxu1  ;;  %v2180_v14 = vpop.f32.mrf.mxu0  ;;  %v982_v25 = vadd.f32 %v981_v6, %v2941_v1 }
 0x12b   : > { %v1470_v57 = vadd.f32 %v2946_v8, %v1431_v10  ;;  %v1532_v43 = vadd.f32 %v1531_v12, %v1500_v9  ;;  %v1434_v17 = vadd.f32 %v2180_v14, %v977_v11  ;;  %v1503_v26 = vmax.f32 %v1471_v13, 0.0 }
 0x12c   : > { %v991_v18 = vpop.f32.mrf.mxu1  ;;  %v1330_v20 = vpop.f32.mrf.mxu0  ;;  %v997_v32 = vadd.f32 %v2134_v55, %v2889_v30 }
 0x12d   : > { %v1502_v21 = vmax.f32 %v1470_v57, 0.0  ;;  %v1433_v45 = vadd.f32 %v1330_v20, %v972_v15  ;;  %v1533_v22 = vadd.f32 %v1532_v43, %v1501_v16  ;;  %v1473_v24 = vadd.f32 %v2946_v8, %v1434_v17 }
 0x12e   : > { %v2137_v59 = vpop.f32.mrf.mxu1  ;;  %v2183_v23 = vpop.f32.mrf.mxu0  ;;  %v992_v37 = vadd.f32 %v991_v18, %v2894_v33 }
 0x12f   : > { %v1472_v61 = vadd.f32 %v2946_v8, %v1433_v45  ;;  %v1534_v47 = vadd.f32 %v1533_v22, %v1502_v21  ;;  %v1436_v27 = vadd.f32 %v2183_v23, %v987_v19  ;;  %v1505_v60 = vmax.f32 %v1473_v24, 0.0 }
 0x130   : > { %v1001_v28 = vpop.f32.mrf.mxu1  ;;  %v1340_v49 = vpop.f32.mrf.mxu0  ;;  %v1007_v39 = vadd.f32 %v2137_v59, %v2899_v36 }
 0x131   : > { %v1504_v29 = vmax.f32 %v1472_v61, 0.0  ;;  %v1435_v31 = vadd.f32 %v1340_v49, %v982_v25  ;;  %v1535_v34 = vadd.f32 %v1534_v47, %v1503_v26  ;;  %v1475_v2 = vadd.f32 %v2946_v8, %v1436_v27 }
 0x132   : > { %v2140_v63 = vpop.f32.mrf.mxu1  ;;  %v2186_v35 = vpop.f32.mrf.mxu0  ;;  %v1002_v6 = vadd.f32 %v1001_v28, %v2901_v38 }
 0x133   : > { %v1474_v1 = vadd.f32 %v2946_v8, %v1435_v31  ;;  %v1536_v62 = vadd.f32 %v1535_v34, %v1504_v29  ;;  %v1438_v51 = vadd.f32 %v2186_v35, %v997_v32  ;;  %v1507_v7 = vmax.f32 %v1475_v2, 0.0 }
 0x134   : > { %v1011_v0 = vpop.f32.mrf.mxu1  ;;  %v1350_v3 = vpop.f32.mrf.mxu0  ;;  %v1017_v57 = vadd.f32 %v2140_v63, %v2903_v40 }
 0x135   : > { %v1506_v53 = vmax.f32 %v1474_v1, 0.0  ;;  %v1437_v5 = vadd.f32 %v1350_v3, %v992_v37  ;;  %v1537_v4 = vadd.f32 %v1536_v62, %v1505_v60  ;;  %v1477_v10 = vadd.f32 %v2946_v8, %v1438_v51 }
 0x136   : > { %v2143_v30 = vpop.f32.mrf.mxu1  ;;  %v2189_v41 = vpop.f32.mrf.mxu0  ;;  %v1012_v13 = vadd.f32 %v1011_v0, %v2905_v42 }
 0x137   : > { %v1476_v33 = vadd.f32 %v2946_v8, %v1437_v5  ;;  %v1538_v9 = vadd.f32 %v1537_v4, %v1506_v53  ;;  %v1440_v11 = vadd.f32 %v2189_v41, %v1007_v39  ;;  %v1509_v17 = vmax.f32 %v1477_v10, 0.0 }
 0x138   : > { %v1021_v12 = vpop.f32.mrf.mxu1  ;;  %v1360_v55 = vpop.f32.mrf.mxu0  ;;  %v1027_v23 = vadd.f32 %v2143_v30, %v2907_v44 }
 0x139   : > { %v1508_v14 = vmax.f32 %v1476_v33, 0.0  ;;  %v1439_v15 = vadd.f32 %v1360_v55, %v1002_v6  ;;  %v1539_v16 = vadd.f32 %v1538_v9, %v1507_v7  ;;  %v1479_v20 = vadd.f32 %v2946_v8, %v1440_v11 }
 0x13a   : > { %v2146_v36 = vpop.f32.mrf.mxu1  ;;  %v2192_v43 = vpop.f32.mrf.mxu0  ;;  %v1022_v26 = vadd.f32 %v1021_v12, %v2909_v46 }
 0x13b   : > { %v1478_v38 = vadd.f32 %v2946_v8, %v1439_v15  ;;  %v1540_v18 = vadd.f32 %v1539_v16, %v1508_v14  ;;  %v1442_v21 = vadd.f32 %v2192_v43, %v1017_v57  ;;  %v1511_v47 = vmax.f32 %v1479_v20, 0.0 }
 0x13c   : > { %v1031_v45 = vpop.f32.mrf.mxu1  ;;  %v1370_v19 = vpop.f32.mrf.mxu0  ;;  %v1037_v34 = vadd.f32 %v2146_v36, %v2913_v48 }
 0x13d   : > { %v1510_v22 = vmax.f32 %v1478_v38, 0.0  ;;  %v1441_v59 = vadd.f32 %v1370_v19, %v1012_v13  ;;  %v1541_v25 = vadd.f32 %v1540_v18, %v1509_v17  ;;  %v1481_v27 = vadd.f32 %v2946_v8, %v1442_v21 }
 0x13e   : > { %v2149_v40 = vpop.f32.mrf.mxu1  ;;  %v2195_v61 = vpop.f32.mrf.mxu0  ;;  %v1032_v35 = vadd.f32 %v1031_v45, %v2917_v50 }
 0x13f   : > { %v1480_v42 = vadd.f32 %v2946_v8, %v1441_v59  ;;  %v1542_v24 = vadd.f32 %v1541_v25, %v1510_v22  ;;  %v1444_v28 = vadd.f32 %v2195_v61, %v1027_v23  ;;  %v1513_v46 = vmax.f32 %v1481_v27, 0.0 }
 0x140   : > { %v1041_v49 = vpop.f32.mrf.mxu1  ;;  %v1380_v29 = vpop.f32.mrf.mxu0  ;;  %v1047_v53 = vadd.f32 %v2149_v40, %v2921_v52 }
 0x141   : > { %v1512_v31 = vmax.f32 %v1480_v42, 0.0  ;;  %v1443_v32 = vadd.f32 %v1380_v29, %v1022_v26  ;;  %v1543_v63 = vadd.f32 %v1542_v24, %v1511_v47  ;;  %v1483_v60 = vadd.f32 %v2946_v8, %v1444_v28  ;;  %v1522_v26 = vld [vmem:[#allocation3] sm:$0x1] }
 0x142   : > { %v2198_v44 = vpop.f32.mrf.mxu0  ;;  %v2152_v62 = vpop.f32.mrf.mxu1  ;;  %v1042_v48 = vadd.f32 %v1041_v49, %v2925_v54 }
 0x143   : > { %v1482_v37 = vadd.f32 %v2946_v8, %v1443_v32  ;;  %v1544_v1 = vadd.f32 %v1543_v63, %v1512_v31  ;;  %v1446_v2 = vadd.f32 %v2198_v44, %v1037_v34  ;;  %v1515_v50 = vmax.f32 %v1483_v60, 0.0 }
 0x144   : > { %v1390_v51 = vpop.f32.mrf.mxu0  ;;  %v1051_v6 = vpop.f32.mrf.mxu1  ;;  %v1057_v11 = vadd.f32 %v2152_v62, %v2929_v56 }
 0x145   : > { %v1514_v0 = vmax.f32 %v1482_v37, 0.0  ;;  %v1445_v3 = vadd.f32 %v1390_v51, %v1032_v35  ;;  %v1545_v5 = vadd.f32 %v1544_v1, %v1513_v46  ;;  %v1485_v41 = vadd.f32 %v2946_v8, %v1446_v2 }
 0x146   : > { %v2201_v39 = vpop.f32.mrf.mxu0  ;;  %v1052_v52 = vadd.f32 %v1051_v6, %v2933_v58 }
 0x147   : > { %v1484_v4 = vadd.f32 %v2946_v8, %v1445_v3  ;;  %v1546_v30 = vadd.f32 %v1545_v5, %v1514_v0  ;;  %v1448_v33 = vadd.f32 %v2201_v39, %v1047_v53  ;;  %v1517_v54 = vmax.f32 %v1485_v41, 0.0 }
 0x148   : > { %v1400_v7 = vpop.f32.mrf.mxu0 }
 0x149   : > { %v1516_v9 = vmax.f32 %v1484_v4, 0.0  ;;  %v1447_v10 = vadd.f32 %v1400_v7, %v1042_v48  ;;  %v1547_v12 = vadd.f32 %v1546_v30, %v1515_v50  ;;  %v1487_v57 = vadd.f32 %v2946_v8, %v1448_v33 }
 0x14a   : > { %v2204_v55 = vpop.f32.mrf.mxu0 }
 0x14b   : > { %v1486_v14 = vadd.f32 %v2946_v8, %v1447_v10  ;;  %v1548_v15 = vadd.f32 %v1547_v12, %v1516_v9  ;;  %v1450_v16 = vadd.f32 %v2204_v55, %v1057_v11  ;;  %v1519_v18 = vmax.f32 %v1487_v57, 0.0 }
 0x14c   : > { %v1410_v36 = vpop.f32.mrf.mxu0 }
 0x14d   : > { %v1518_v43 = vmax.f32 %v1486_v14, 0.0  ;;  %v1449_v13 = vadd.f32 %v1410_v36, %v1052_v52  ;;  %v1549_v38 = vadd.f32 %v1548_v15, %v1517_v54  ;;  %v1489_v56 = vadd.f32 %v2946_v8, %v1450_v16 }
 0x14f   : > { %v1488_v17 = vadd.f32 %v2946_v8, %v1449_v13  ;;  %v1550_v20 = vadd.f32 %v1549_v38, %v1518_v43  ;;  %v1521_v58 = vmax.f32 %v1489_v56, 0.0  ;;  %v1583_v8 = vld [vmem:[%s3076_s5] sm:$0x1] }
 0x151   : > { %v1520_v21 = vmax.f32 %v1488_v17, 0.0  ;;  %v1551_v45 = vadd.f32 %v1550_v20, %v1519_v18 }
 0x153   : > { %v1552_v19 = vadd.f32 %v1551_v45, %v1520_v21 }
 0x155   : > { %v1553_v22 = vadd.f32 %v1552_v19, %v1521_v58 }
 0x157   : > { %v1554_v59 = vrot.slane %v1553_v22, 4 }
 0x159   : > { %v1555_v23 = vadd.f32 %v1554_v59, %v1553_v22 }
 0x15b   : > { %v1556_v25 = vrot.slane %v1555_v23, 2 }
 0x15d   : > { %v1557_v40 = vadd.f32 %v1556_v25, %v1555_v23 }
 0x15f   : > { %v1558_v61 = vrot.slane %v1557_v40, 1 }
 0x161   : > { %v1559_v42 = vadd.f32 %v1558_v61, %v1557_v40 }
 0x163   : > { %v1560_v47 = vadd.f32 %v1559_v42, %v1522_v26 }
 0x165   : > { %1561 = vst [vmem:[#allocation3] sm:$0x1] %v1560_v47 }
 0x16c   : > { %v1565_v24 = vld [vmem:[#allocation3] sm:$0x1] }
 0x16d   : > { %v1566_v27 = vmul.f32 0.00390625, %v1565_v24 }
 0x16f   : > { %2238 = vmatmul.mubr.f32.vlgmr.msra.gmra.mxu1 %v1566_v27 }
 0x22f   : > { %v1650_v28 = vpop.f32.mrf.mxu1 }
 0x230   : > { %v1651_v49 = vadd.f32 %v1650_v28, %v1583_v8 }
 0x231   : > { %v2239_v29 = vpop.f32.mrf.mxu1 }
 0x232   : > { %v1655_v31 = vsel %vm1654_vm3, %v1651_v49, -inf  ;;  %1665 = vst [vmem:[%s345_s21] sm:$0x1] %v1651_v49 }
 0x233   : > { %1656 = vmax.xlane.f32.xlu0 %v1655_v31 }
 0x2bc   : > { %v1657_v32 = vpop.xlane.xlu0 %1656 }
 0x2bd   : > { %v1658_v34 = vsub.f32 %v1651_v49, %v1657_v32 }
 0x2bf   : > { %v1659_v63 = vmul.f32 1.442695, %v1658_v34 }
 0x2c1   : > { %2309 = vpow2.f32 %v1659_v63 }
 0x2ce   : > { %v2310_v44 = vpop.eup %2309 }
 0x2cf   : > { %v1661_v35 = vsel %vm1654_vm3, %v2310_v44, 0.0 }
 0x2d0   : > { %1662 = vadd.xlane.f32.xlu0 %v1661_v35 }
 0x2d1   : > { %2326 = shalt.err (!%p2323_p5)
}
 0x2d2   : > { %s2327_s19 = scalar_lea.hbm %s1683_s8, 16  ;;  %s2331_s30 = scalar_lea.hbm %s3077_s6, 32 }
 0x2d3   : > { %p2328_p6 = scmp.ne.s32.totalorder %s1683_s8, %s2327_s19  ;;  %p2332_p10 = scmp.lt.s32.totalorder %s1683_s8, %s3077_s6 }
 0x2d4   : > { %p2333_p11 = scmp.lt.s32.totalorder %s2331_s30, %s2327_s19 }
 0x2d5   : > { %p2329_p7 = pnand %p2328_p6, %p2505_p4 }
 0x2d6   : > { %p2334_p12 = por %p2333_p11, %p2332_p10 }
 0x2d7   : > { %p2330_p9 = pneg %p2329_p7 }
 0x2d9   : > { %p2335_p13 = pnand %p2334_p12, %p2330_p9 }
 0x2db   : > { %2338 = shalt.err (!%p2335_p13)
}
 0x2dc   : > { %2246 = dma.vmem_to_hbm [thread:$0]  (%p2505_p4), %s1686_s10, 16, %s1683_s8, %s1669_s12  }
 0x2dd   : > { %s351_s15 = scalar_lea.vmem [#allocation6], %s3005_s18  ;;  %s3084_s17 = sshll.u32 %s2411_s27, 4 }
 0x2de   : > { %s1698_s16 = sshll.u32 %s351_s15, 4  ;;  %s1696_s20 = scalar_lea.hbm %s3078_s7, %s3084_s17  ;;  %s1699_s16 = int_to_ptr.vmem [resolvable:$true] %s1698_s16 }
 0x2df   : > { %s1673_s19 = scalar_lea.sflag [#allocation7], %s3005_s18  ;;  %s2339_s21 = scalar_lea.vmem %s1699_s16, 16 }
 0x2e0   : > { %p2340_p0 = scmp.ne.s32.totalorder %s1699_s16, %s2339_s21  ;;  %s2424_s8 = smov [#allocation6]  }
 0x2e1   : > { %s2343_s10 = sshll.u32 %s2424_s8, 4  ;;  %s2344_s10 = int_to_ptr.vmem [resolvable:$false] %s2343_s10 }
 0x2e2   : > { %p2341_p1 = pnand %p2340_p0, %p2505_p4  ;;  %s2345_s12 = scalar_lea.vmem %s2344_s10, 32 }
 0x2e3   : > { %p2346_p3 = scmp.lt.s32.totalorder %s1699_s16, %s2344_s10  ;;  %p2347_p5 = scmp.lt.s32.totalorder %s2345_s12, %s2339_s21 }
 0x2e4   : > { %p2342_p2 = pneg %p2341_p1 }
 0x2e5   : > { %p2348_p6 = por %p2347_p5, %p2346_p3 }
 0x2e7   : > { %p2349_p7 = pnand %p2348_p6, %p2342_p2 }
 0x359   : > { %v1663_v37 = vpop.xlane.xlu0 %1662 }
 0x35a   : > { %2311 = vrcp.f32 %v1663_v37 }
 0x367   : > { %v2312_v46 = vpop.eup %2311 }
 0x368   : > { %v1666_v1 = vmul.f32 %v2312_v46, %v2310_v44 }
 0x36a   : > { %1667 = vst [vmem:[%s351_s15] sm:$0x1] %v1666_v1 }
 0x36b   : > { %2352 = shalt.err (!%p2349_p7)
}
 0x36c   : > { %s2353_s27 = scalar_lea.hbm %s1696_s20, 16  ;;  %s2357_s30 = scalar_lea.hbm %s3078_s7, 32 }
 0x36d   : > { %p2354_p9 = scmp.ne.s32.totalorder %s1696_s20, %s2353_s27  ;;  %p2358_p12 = scmp.lt.s32.totalorder %s1696_s20, %s3078_s7 }
 0x36e   : > { %p2359_p13 = scmp.lt.s32.totalorder %s2357_s30, %s2353_s27 }
 0x36f   : > { %p2355_p10 = pnand %p2354_p9, %p2505_p4 }
 0x370   : > { %p2360_p0 = por %p2359_p13, %p2358_p12 }
 0x371   : > { %p2356_p11 = pneg %p2355_p10 }
 0x373   : > { %p2361_p1 = pnand %p2360_p0, %p2356_p11 }
 0x375   : > { %2364 = shalt.err (!%p2361_p1)
}
 0x376   : > { %2247 = dma.vmem_to_hbm [thread:$0]  (%p2505_p4), %s1699_s16, 16, %s1696_s20, %s1673_s19  }
 0x377 PF: > { %p2258_p2 = scmp.ge.s32.totalorder %s2419_s29, 2  ;;  %s1710_s0 = sand.u32 1, %s2399_s24  }
 0x378   : > { %s1711_s22 = scalar_lea.sflag [#allocation5], %s1710_s0 }
 0x379   : > { %p2251_p3 = pnand %p2258_p2, %p2512_p8 }
 0x37b   : > { %p2252_p5 = pneg %p2251_p3 }
 0x37d   : > { %2390 = dma.done.wait (%p2252_p5), %s1711_s22, 16  }
 0x37e   : > { %2392 = vsyncadd (%p2252_p5), %s1711_s22, 4294967280  ;;  %s1719_s21 = scalar_lea.sflag [#allocation7], %s1710_s0 }
 0x37f   : > { %2394 = dma.done.wait (%p2252_p5), %s1719_s21, 16  }
 0x380   : > { %2396 = vsyncadd (%p2252_p5), %s1719_s21, 4294967280  ;;  %s24_s29 = sadd.s32 1, %s2419_s29   ;;  %s3085_s24 = smov %s2403_s25 }
 0x381   : > { %p21_p6 = scmp.ge.s32.totalorder %s24_s29, 4   ;;  %s3086_s25 = smov %s2407_s26 }
 0x382   : > { %s3087_s26 = smov %s2518_s14  ;;  %s3088_s27 = smov %s2415_s28 }
 0x383   : > { %s3089_s28 = smov %s3091_s9  ;;  %23 = sbr.rel (!%p21_p6) target bundleno = 8 (0x8), region = 109 }
 0x388   :  { %1723 = vsyncpa [#allocation5], 1 }
 0x389   :  { %1725 = vsyncpa [#allocation5 + $0x1], 1 }
 0x38a   :  { %1726 = vsyncpa [#allocation7], 1 }
 0x38b   :  { %1728 = vsyncpa [#allocation7 + $0x1], 1 }

</bundles_post_ra>
